<compile_context>
chip_gen: v7x
topology: tpu7x:2x2x1
jax: 0.10.0
libtpu: 0.0.40
codegen_flags: <defaults>
</compile_context>

<pallas_src>
import jax
import jax.numpy as jnp
import numpy as np
from jax.experimental import pallas as pl
from jax.experimental.pallas import tpu as pltpu


# --------------------------------- kernel ------------------------------------
def _bottleneck_head_kernel(x_ref, w1_ref, b1_ref, w2_ref, b2_ref, o_ref, emb_ref):
    # x_ref  : [TB, F]       activation tile
    # w1_ref : [F, D_pad]    embedding_generator weight ([in, out] layout)
    # b1_ref : [1, D_pad]    embedding_generator bias
    # w2_ref : [D_pad, TC]   FC weight class tile ([in, out] layout)
    # b2_ref : [1, TC]       FC bias class tile
    # o_ref  : [TB, TC]      logits tile
    # emb_ref: [TB, D_pad]   f32 scratch holding the bottleneck embedding

    # Layer 1 runs once per batch tile; the class axis is the innermost grid axis,
    # so the embedding is reused for every class tile of this batch tile.
    @pl.when(pl.program_id(1) == 0)
    def _():
        emb = jnp.dot(x_ref[...], w1_ref[...], preferred_element_type=jnp.float32)
        emb_ref[...] = emb + b1_ref[...].astype(jnp.float32)

    # Layer 2 on the current class tile.  When compute dtype is bf16 the f32
    # embedding is rounded to bf16 for a single-pass MXU matmul (documented
    # precision trade-off); with f32 weights the astype is a no-op.
    logits = jnp.dot(emb_ref[...].astype(w2_ref.dtype), w2_ref[...],
                     preferred_element_type=jnp.float32)
    logits = logits + b2_ref[...].astype(jnp.float32)
    o_ref[...] = logits.astype(o_ref.dtype)


# ------------------------------- helpers --------------------------------------
def _round_up(v, m):
    return ((v + m - 1) // m) * m


def _vmem_limit_bytes():
    # 75% of physical VMEM, capped at 96 MiB: ~48 MiB on v7x (64 MiB physical,
    # keeps headroom for compiler scratch / DMA descriptors), 96 MiB on v5e/v6e.
    try:
        cap = pltpu.get_tpu_info().vmem_capacity_bytes
    except Exception:  # pragma: no cover - fallback for older runtimes
        cap = 128 * 1024 * 1024
    return min(int(cap) * 3 // 4, 96 * 1024 * 1024)


# -------------------------------- wrapper ------------------------------------
def bottleneck_head_forward(x, w1, b1, w2, b2, *, block_b=256, block_c=2048,
                            compute_dtype=None):
    """Fused two-layer linear head.

    x: [B, F], w1: [F, D], b1: [D], w2: [D, C], b2: [C]  ->  logits [B, C].
    Weights are in [in, out] layout (PyTorch nn.Linear weight transposed).
    """
    B, F = x.shape
    Fw, D = w1.shape
    Dw, C = w2.shape
    assert F == Fw and D == Dw, "weight shapes inconsistent with x"

    out_dtype = x.dtype
    if compute_dtype is not None:
        x = x.astype(compute_dtype)
        w1 = w1.astype(compute_dtype)
        w2 = w2.astype(compute_dtype)
        b1 = b1.astype(compute_dtype)
        b2 = b2.astype(compute_dtype)

    # Lane-align bottleneck and class dims (zero padding keeps the math exact:
    # padded w1 columns / b1 entries are zero, padded w2 rows are zero).
    D_pad = _round_up(D, 128)
    C_pad = _round_up(C, 128)
    if D_pad != D:
        w1 = jnp.pad(w1, ((0, 0), (0, D_pad - D)))
        b1 = jnp.pad(b1, ((0, D_pad - D),))
        w2 = jnp.pad(w2, ((0, D_pad - D), (0, 0)))
    if C_pad != C:
        w2 = jnp.pad(w2, ((0, 0), (0, C_pad - C)))
        b2 = jnp.pad(b2, ((0, C_pad - C),))
    b1_2d = b1.reshape(1, D_pad)
    b2_2d = b2.reshape(1, C_pad)

    # Tiles.  Batch tile: large (amortizes the ~600-cycle per-grid-step overhead
    # and fills the MXU rows), collapsing to a single round_up(B, 8) tile for
    # small B.  Class tile: lane-dense multiple of 128 so stores are unmasked.
    TB = max(8, min(_round_up(B, 8), _round_up(int(block_b), 8)))
    TC = max(128, min(C_pad, _round_up(int(block_c), 128)))
    grid = (pl.cdiv(B, TB), pl.cdiv(C_pad, TC))

    def _build(single_buffer_weights):
        # Grid-invariant operands (constant index_map) don't need double
        # buffering; Buffered(1) reclaims the second buffer's VMEM.
        w_kwargs = dict(pipeline_mode=pl.Buffered(1)) if single_buffer_weights else {}
        in_specs = [
            pl.BlockSpec((TB, F), lambda i, j: (i, 0)),                 # x tile (pipelined)
            pl.BlockSpec((F, D_pad), lambda i, j: (0, 0), **w_kwargs),  # W1: resident
            pl.BlockSpec((1, D_pad), lambda i, j: (0, 0), **w_kwargs),  # b1: resident
            pl.BlockSpec((D_pad, TC), lambda i, j: (0, j)),             # W2 class tile
            pl.BlockSpec((1, TC), lambda i, j: (0, j)),                 # b2 class tile
        ]
        return pl.pallas_call(
            _bottleneck_head_kernel,
            out_shape=jax.ShapeDtypeStruct((B, C_pad), out_dtype),
            grid_spec=pltpu.PrefetchScalarGridSpec(
                num_scalar_prefetch=0,
                grid=grid,
                in_specs=in_specs,
                out_specs=pl.BlockSpec((TB, TC), lambda i, j: (i, j)),
                scratch_shapes=[pltpu.VMEM((TB, D_pad), jnp.float32)],
            ),
            compiler_params=pltpu.CompilerParams(
                # Batch tiles are independent (shardable across v7x's 2 TCs);
                # the class axis carries the emb scratch -> "arbitrary".
                dimension_semantics=("parallel", "arbitrary"),
                vmem_limit_bytes=_vmem_limit_bytes(),
            ),
        )

    try:
        out = _build(True)(x, w1, b1_2d, w2, b2_2d)
    except Exception:
        # Fallback for JAX versions without BlockSpec.pipeline_mode / Buffered(1).
        out = _build(False)(x, w1, b1_2d, w2, b2_2d)

    return out[:, :C]


# ------------------------- pure-JAX reference (check) ------------------------
def reference_forward(x, w1, b1, w2, b2):
    emb = x @ w1 + b1
    return emb @ w2 + b2


if __name__ == "__main__":
    key = jax.random.PRNGKey(0)
    kx, k1, k2, k3, k4 = jax.random.split(key, 5)

    # Small shapes consistent with the module: num_features=32,
    # bottleneck_features=200 (module default), num_classes=48, batch=16.
    B, F, D, C = 16, 32, 200, 48

    x = jax.random.normal(kx, (B, F), dtype=jnp.float32)
    # Weights in [in, out] layout (== PyTorch nn.Linear weight transposed);
    # forward semantics identical: x @ W_pt^T + b  ==  x @ w + b here.
    w1 = jax.random.normal(k1, (F, D), dtype=jnp.float32) * (1.0 / np.sqrt(F))
    b1 = jax.random.normal(k2, (D,), dtype=jnp.float32) * 0.01
    w2 = jax.random.normal(k3, (D, C), dtype=jnp.float32) * (1.0 / np.sqrt(D))
    b2 = jax.random.normal(k4, (C,), dtype=jnp.float32) * 0.01

    ref = jax.block_until_ready(reference_forward(x, w1, b1, w2, b2))

    # f32 path (exact vs reference).
    logits = jax.block_until_ready(bottleneck_head_forward(x, w1, b1, w2, b2))
    np.testing.assert_allclose(np.asarray(logits), np.asarray(ref),
                               rtol=1e-4, atol=1e-4)

    # bf16 compute path (the recommended memory-bound configuration); loose tol.
    logits_bf16 = jax.block_until_ready(
        bottleneck_head_forward(x, w1, b1, w2, b2, compute_dtype=jnp.bfloat16))
    np.testing.assert_allclose(np.asarray(logits_bf16), np.asarray(ref),
                               rtol=5e-2, atol=2.5e-1)

    print("KERNEL_OK")
</pallas_src>

<mosaic_0001>
module attributes {stable_mosaic.version = 11 : i64} {
  func.func @_bottleneck_head_kernel(%arg0: i32, %arg1: i32, %arg2: memref<16x32xf32, #tpu.memory_space<vmem>>, %arg3: memref<32x256xf32, #tpu.memory_space<vmem>>, %arg4: memref<1x256xf32, #tpu.memory_space<vmem>>, %arg5: memref<256x128xf32, #tpu.memory_space<vmem>>, %arg6: memref<1x128xf32, #tpu.memory_space<vmem>>, %arg7: memref<16x128xf32, #tpu.memory_space<vmem>>, %arg8: memref<16x256xf32, #tpu.memory_space<vmem>>) attributes {dimension_semantics = [#tpu.dimension_semantics<parallel>, #tpu.dimension_semantics<arbitrary>], iteration_bounds = array<i64: 1, 1>, scalar_prefetch = 0 : i64, scratch_operands = 1 : i64, tpu.core_type = #tpu.core_type<tc>, window_params = [{transform_indices = @transform_0, window_bounds = array<i64: 16, 32>}, {pipeline_mode = #tpu.pipeline_mode<synchronous>, transform_indices = @transform_1, window_bounds = array<i64: 32, 256>}, {pipeline_mode = #tpu.pipeline_mode<synchronous>, transform_indices = @transform_2, window_bounds = array<i64: 1, 256>}, {transform_indices = @transform_3, window_bounds = array<i64: 256, 128>}, {transform_indices = @transform_4, window_bounds = array<i64: 1, 128>}, {transform_indices = @transform_5, window_bounds = array<i64: 16, 128>}]} {
    %c0_i32 = arith.constant 0 : i32
    %0 = arith.cmpi eq, %arg1, %c0_i32 : i32
    %1 = arith.extui %0 : i1 to i32
    %c0_i32_0 = arith.constant 0 : i32
    %2 = arith.cmpi ne, %1, %c0_i32_0 : i32
    scf.if %2 {
      %c0_8 = arith.constant 0 : index
      %c0_9 = arith.constant 0 : index
      %10 = vector.load %arg2[%c0_8, %c0_9] : memref<16x32xf32, #tpu.memory_space<vmem>>, vector<16x32xf32>
      %c0_10 = arith.constant 0 : index
      %c0_11 = arith.constant 0 : index
      %11 = vector.load %arg3[%c0_10, %c0_11] : memref<32x256xf32, #tpu.memory_space<vmem>>, vector<32x256xf32>
      %cst_12 = arith.constant dense<0.000000e+00> : vector<16x256xf32>
      %12 = tpu.matmul %10, %11, %cst_12 {dimension_numbers = #tpu.dot_dimension_numbers<[1], [0], [0], [1], [0, 0, 1, 1], [], []>} : vector<16x32xf32>, vector<32x256xf32>, vector<16x256xf32> -> vector<16x256xf32>
      %c0_13 = arith.constant 0 : index
      %c0_14 = arith.constant 0 : index
      %13 = vector.load %arg4[%c0_13, %c0_14] : memref<1x256xf32, #tpu.memory_space<vmem>>, vector<1x256xf32>
      %14 = vector.broadcast %13 : vector<1x256xf32> to vector<16x256xf32>
      %15 = arith.addf %12, %14 : vector<16x256xf32>
      %c0_15 = arith.constant 0 : index
      %c0_16 = arith.constant 0 : index
      %16 = vector.load %arg8[%c0_15, %c0_16] : memref<16x256xf32, #tpu.memory_space<vmem>>, vector<16x256xf32>
      tpu.vector_store %arg8[%c0_15, %c0_16], %15 {strides = array<i32>} : memref<16x256xf32, #tpu.memory_space<vmem>>, vector<16x256xf32>,
    } else {
    }
    %c0 = arith.constant 0 : index
    %c0_1 = arith.constant 0 : index
    %3 = vector.load %arg8[%c0, %c0_1] : memref<16x256xf32, #tpu.memory_space<vmem>>, vector<16x256xf32>
    %c0_2 = arith.constant 0 : index
    %c0_3 = arith.constant 0 : index
    %4 = vector.load %arg5[%c0_2, %c0_3] : memref<256x128xf32, #tpu.memory_space<vmem>>, vector<256x128xf32>
    %cst = arith.constant dense<0.000000e+00> : vector<16x128xf32>
    %5 = tpu.matmul %3, %4, %cst {dimension_numbers = #tpu.dot_dimension_numbers<[1], [0], [0], [1], [0, 0, 1, 1], [], []>} : vector<16x256xf32>, vector<256x128xf32>, vector<16x128xf32> -> vector<16x128xf32>
    %c0_4 = arith.constant 0 : index
    %c0_5 = arith.constant 0 : index
    %6 = vector.load %arg6[%c0_4, %c0_5] : memref<1x128xf32, #tpu.memory_space<vmem>>, vector<1x128xf32>
    %7 = vector.broadcast %6 : vector<1x128xf32> to vector<16x128xf32>
    %8 = arith.addf %5, %7 : vector<16x128xf32>
    %c0_6 = arith.constant 0 : index
    %c0_7 = arith.constant 0 : index
    %9 = vector.load %arg7[%c0_6, %c0_7] : memref<16x128xf32, #tpu.memory_space<vmem>>, vector<16x128xf32>
    tpu.vector_store %arg7[%c0_6, %c0_7], %8 {strides = array<i32>} : memref<16x128xf32, #tpu.memory_space<vmem>>, vector<16x128xf32>,
    return
  }
  func.func @transform_0(%arg0: i32, %arg1: i32) -> (i32, i32) {
    %c0_i32 = arith.constant 0 : i32
    %c0_i32_0 = arith.constant 0 : i32
    return %arg0, %c0_i32 : i32, i32
  }
  func.func @transform_1(%arg0: i32, %arg1: i32) -> (i32, i32) {
    %c0_i32 = arith.constant 0 : i32
    %c0_i32_0 = arith.constant 0 : i32
    %c0_i32_1 = arith.constant 0 : i32
    return %c0_i32, %c0_i32_0 : i32, i32
  }
  func.func @transform_2(%arg0: i32, %arg1: i32) -> (i32, i32) {
    %c0_i32 = arith.constant 0 : i32
    %c0_i32_0 = arith.constant 0 : i32
    %c0_i32_1 = arith.constant 0 : i32
    return %c0_i32, %c0_i32_0 : i32, i32
  }
  func.func @transform_3(%arg0: i32, %arg1: i32) -> (i32, i32) {
    %c0_i32 = arith.constant 0 : i32
    %c0_i32_0 = arith.constant 0 : i32
    return %c0_i32, %arg1 : i32, i32
  }
  func.func @transform_4(%arg0: i32, %arg1: i32) -> (i32, i32) {
    %c0_i32 = arith.constant 0 : i32
    %c0_i32_0 = arith.constant 0 : i32
    return %c0_i32, %arg1 : i32, i32
  }
  func.func @transform_5(%arg0: i32, %arg1: i32) -> (i32, i32) {
    %c0_i32 = arith.constant 0 : i32
    return %arg0, %arg1 : i32, i32
  }
}

module attributes {stable_mosaic.version = 11 : i64} {
  func.func @_bottleneck_head_kernel(%arg0: i32, %arg1: i32, %arg2: memref<16x32xf32, #tpu.memory_space<vmem>>, %arg3: memref<32x256xf32, #tpu.memory_space<vmem>>, %arg4: memref<1x256xf32, #tpu.memory_space<vmem>>, %arg5: memref<256x128xf32, #tpu.memory_space<vmem>>, %arg6: memref<1x128xf32, #tpu.memory_space<vmem>>, %arg7: memref<16x128xf32, #tpu.memory_space<vmem>>, %arg8: memref<16x256xf32, #tpu.memory_space<vmem>>) attributes {dimension_semantics = [#tpu.dimension_semantics<parallel>, #tpu.dimension_semantics<arbitrary>], iteration_bounds = array<i64: 1, 1>, scalar_prefetch = 0 : i64, scratch_operands = 1 : i64, tpu.core_type = #tpu.core_type<tc>, window_params = [{transform_indices = @transform_0, window_bounds = array<i64: 16, 32>}, {pipeline_mode = #tpu.pipeline_mode<synchronous>, transform_indices = @transform_1, window_bounds = array<i64: 32, 256>}, {pipeline_mode = #tpu.pipeline_mode<synchronous>, transform_indices = @transform_2, window_bounds = array<i64: 1, 256>}, {transform_indices = @transform_3, window_bounds = array<i64: 256, 128>}, {transform_indices = @transform_4, window_bounds = array<i64: 1, 128>}, {transform_indices = @transform_5, window_bounds = array<i64: 16, 128>}]} {
    %c0_i32 = arith.constant 0 : i32
    %0 = arith.cmpi eq, %arg1, %c0_i32 : i32
    %1 = arith.extui %0 : i1 to i32
    %c0_i32_0 = arith.constant 0 : i32
    %2 = arith.cmpi ne, %1, %c0_i32_0 : i32
    scf.if %2 {
      %c0_8 = arith.constant 0 : index
      %c0_9 = arith.constant 0 : index
      %10 = vector.load %arg2[%c0_8, %c0_9] : memref<16x32xf32, #tpu.memory_space<vmem>>, vector<16x32xf32>
      %c0_10 = arith.constant 0 : index
      %c0_11 = arith.constant 0 : index
      %11 = vector.load %arg3[%c0_10, %c0_11] : memref<32x256xf32, #tpu.memory_space<vmem>>, vector<32x256xf32>
      %cst_12 = arith.constant dense<0.000000e+00> : vector<16x256xf32>
      %12 = tpu.matmul %10, %11, %cst_12 {dimension_numbers = #tpu.dot_dimension_numbers<[1], [0], [0], [1], [0, 0, 1, 1], [], []>} : vector<16x32xf32>, vector<32x256xf32>, vector<16x256xf32> -> vector<16x256xf32>
      %c0_13 = arith.constant 0 : index
      %c0_14 = arith.constant 0 : index
      %13 = vector.load %arg4[%c0_13, %c0_14] : memref<1x256xf32, #tpu.memory_space<vmem>>, vector<1x256xf32>
      %14 = vector.broadcast %13 : vector<1x256xf32> to vector<16x256xf32>
      %15 = arith.addf %12, %14 : vector<16x256xf32>
      %c0_15 = arith.constant 0 : index
      %c0_16 = arith.constant 0 : index
      %16 = vector.load %arg8[%c0_15, %c0_16] : memref<16x256xf32, #tpu.memory_space<vmem>>, vector<16x256xf32>
      tpu.vector_store %arg8[%c0_15, %c0_16], %15 {strides = array<i32>} : memref<16x256xf32, #tpu.memory_space<vmem>>, vector<16x256xf32>,
    } else {
    }
    %c0 = arith.constant 0 : index
    %c0_1 = arith.constant 0 : index
    %3 = vector.load %arg8[%c0, %c0_1] : memref<16x256xf32, #tpu.memory_space<vmem>>, vector<16x256xf32>
    %c0_2 = arith.constant 0 : index
    %c0_3 = arith.constant 0 : index
    %4 = vector.load %arg5[%c0_2, %c0_3] : memref<256x128xf32, #tpu.memory_space<vmem>>, vector<256x128xf32>
    %cst = arith.constant dense<0.000000e+00> : vector<16x128xf32>
    %5 = tpu.matmul %3, %4, %cst {dimension_numbers = #tpu.dot_dimension_numbers<[1], [0], [0], [1], [0, 0, 1, 1], [], []>} : vector<16x256xf32>, vector<256x128xf32>, vector<16x128xf32> -> vector<16x128xf32>
    %c0_4 = arith.constant 0 : index
    %c0_5 = arith.constant 0 : index
    %6 = vector.load %arg6[%c0_4, %c0_5] : memref<1x128xf32, #tpu.memory_space<vmem>>, vector<1x128xf32>
    %7 = vector.broadcast %6 : vector<1x128xf32> to vector<16x128xf32>
    %8 = arith.addf %5, %7 : vector<16x128xf32>
    %c0_6 = arith.constant 0 : index
    %c0_7 = arith.constant 0 : index
    %9 = vector.load %arg7[%c0_6, %c0_7] : memref<16x128xf32, #tpu.memory_space<vmem>>, vector<16x128xf32>
    tpu.vector_store %arg7[%c0_6, %c0_7], %8 {strides = array<i32>} : memref<16x128xf32, #tpu.memory_space<vmem>>, vector<16x128xf32>,
    return
  }
  func.func @transform_0(%arg0: i32, %arg1: i32) -> (i32, i32) {
    %c0_i32 = arith.constant 0 : i32
    %c0_i32_0 = arith.constant 0 : i32
    return %arg0, %c0_i32 : i32, i32
  }
  func.func @transform_1(%arg0: i32, %arg1: i32) -> (i32, i32) {
    %c0_i32 = arith.constant 0 : i32
    %c0_i32_0 = arith.constant 0 : i32
    %c0_i32_1 = arith.constant 0 : i32
    return %c0_i32, %c0_i32_0 : i32, i32
  }
  func.func @transform_2(%arg0: i32, %arg1: i32) -> (i32, i32) {
    %c0_i32 = arith.constant 0 : i32
    %c0_i32_0 = arith.constant 0 : i32
    %c0_i32_1 = arith.constant 0 : i32
    return %c0_i32, %c0_i32_0 : i32, i32
  }
  func.func @transform_3(%arg0: i32, %arg1: i32) -> (i32, i32) {
    %c0_i32 = arith.constant 0 : i32
    %c0_i32_0 = arith.constant 0 : i32
    return %c0_i32, %arg1 : i32, i32
  }
  func.func @transform_4(%arg0: i32, %arg1: i32) -> (i32, i32) {
    %c0_i32 = arith.constant 0 : i32
    %c0_i32_0 = arith.constant 0 : i32
    return %c0_i32, %arg1 : i32, i32
  }
  func.func @transform_5(%arg0: i32, %arg1: i32) -> (i32, i32) {
    %c0_i32 = arith.constant 0 : i32
    return %arg0, %arg1 : i32, i32
  }
}

</mosaic_0001>

<bundles_post_ra>
// kernel: tpu_custom_call.1
= control target key start
LH: loop header
LB: loop body
LE: loop exit
PB: predicated region body
PF: predicated region fallthrough
CT: control target
= control target key end

     0   :  { %10 = vsyncpa [#allocation4], 0  ;;  %s694_s0 = inlined_call_operand.hbm [shape: f32[16,32], index: 0, kind: input, shape index: {}]   ;;  %s695_s1 = inlined_call_operand.hbm [shape: f32[32,256], index: 1, kind: input, shape index: {}]   ;;  %s696_s2 = inlined_call_operand.hbm [shape: f32[1,256], index: 2, kind: input, shape index: {}]   ;;  %s697_s3 = inlined_call_operand.hbm [shape: f32[256,128], index: 3, kind: input, shape index: {}]   ;;  %s698_s4 = inlined_call_operand.hbm [shape: f32[1,128], index: 4, kind: input, shape index: {}]   ;;  %s699_s5 = inlined_call_operand.hbm [shape: f32[16,128], index: 5, kind: output, shape index: {}]  }
   0x1   :  { %11 = vsyncpa [#allocation7], 0 }
   0x2   :  { %12 = vsyncpa [#allocation10], 0 }
   0x3   :  { %13 = vsyncpa [#allocation5], 0  ;;  %s570_s18 = smov [#allocation6]   ;;  %s430_s22 = scalar_lea.hbm %s695_s1, 1024 }
   0x4   :  { %s31_s19 = sshll.u32 %s570_s18, 4  ;;  %p431_p0 = scmp.ne.s32.totalorder %s695_s1, %s430_s22  ;;  %s32_s19 = int_to_ptr.vmem [resolvable:$true] %s31_s19 }
   0x5   :  { %p434_p1 = scmp.lt.u32.totalorder %s430_s22, %s695_s1 }
   0x7   :  { %p436_p2 = pnand %p434_p1, %p431_p0 }
   0x9   :  { %439 = shalt.err (!%p436_p2)
}
   0xa   :  { %s440_s27 = scalar_lea.vmem %s32_s19, 1024  ;;  %p445_p4 = scmp.lt.s32.totalorder %s32_s19, %s32_s19 }
   0xb   :  { %p441_p3 = scmp.ne.s32.totalorder %s32_s19, %s440_s27  ;;  %p446_p5 = scmp.lt.s32.totalorder %s440_s27, %s440_s27 }
   0xd   :  { %p447_p6 = por %p446_p5, %p445_p4 }
   0xf   :  { %p448_p7 = pnand %p447_p6, %p441_p3 }
  0x11   :  { %451 = shalt.err (!%p448_p7)
}
  0x12   :  { %s571_s28 = smov 256   ;;  %s572_s29 = smov 16  }
  0x13   :  { %37 = dma.hbm_to_vmem [thread:$0]  %s695_s1, 1024, %s32_s19, [#allocation7], %s571_s28, %s571_s28, %s572_s29  }
  0x14   :  { %s573_s7 = smov [#allocation9]   ;;  %s574_s9 = smov [#allocation3]  }
  0x15   :  { %s53_s8 = sshll.u32 %s573_s7, 4  ;;  %s19_s10 = sshll.u32 %s574_s9, 4  ;;  %s54_s8 = int_to_ptr.vmem [resolvable:$true] %s53_s8  ;;  %s20_s10 = int_to_ptr.vmem [resolvable:$true] %s19_s10 }
  0x16   :  { %s452_s13 = scalar_lea.hbm %s697_s3, 4096 }
  0x17   :  { %p453_p8 = scmp.ne.s32.totalorder %s697_s3, %s452_s13  ;;  %p456_p9 = scmp.lt.u32.totalorder %s452_s13, %s697_s3 }
  0x19   :  { %p458_p10 = pnand %p456_p9, %p453_p8 }
  0x1b   :  { %461 = shalt.err (!%p458_p10)
}
  0x1c   :  { %s462_s1 = scalar_lea.vmem %s54_s8, 4096  ;;  %p467_p12 = scmp.lt.s32.totalorder %s54_s8, %s54_s8 }
  0x1d   :  { %p463_p11 = scmp.ne.s32.totalorder %s54_s8, %s462_s1  ;;  %p468_p13 = scmp.lt.s32.totalorder %s462_s1, %s462_s1 }
  0x1f   :  { %p469_p0 = por %p468_p13, %p467_p12 }
  0x21   :  { %p470_p1 = pnand %p469_p0, %p463_p11 }
  0x23   :  { %473 = shalt.err (!%p470_p1)
}
  0x24   :  { %s575_s18 = smov 128   ;;  %s576_s19 = smov 8  }
  0x25   :  { %59 = dma.hbm_to_vmem [thread:$0]  %s697_s3, 4096, %s54_s8, [#allocation10], %s575_s18, %s575_s18, %s576_s19  }
  0x26   :  { %s474_s24 = scalar_lea.hbm %s694_s0, 256 }
  0x27   :  { %p475_p2 = scmp.ne.s32.totalorder %s694_s0, %s474_s24  ;;  %p478_p3 = scmp.lt.u32.totalorder %s474_s24, %s694_s0 }
  0x29   :  { %p480_p4 = pnand %p478_p3, %p475_p2 }
  0x2b   :  { %483 = shalt.err (!%p480_p4)
}
  0x2c   :  { %s484_s29 = scalar_lea.vmem %s20_s10, 256  ;;  %p489_p6 = scmp.lt.s32.totalorder %s20_s10, %s20_s10 }
  0x2d   :  { %p485_p5 = scmp.ne.s32.totalorder %s20_s10, %s484_s29  ;;  %p490_p7 = scmp.lt.s32.totalorder %s484_s29, %s484_s29 }
  0x2f   :  { %p491_p8 = por %p490_p7, %p489_p6 }
  0x31   :  { %p492_p9 = pnand %p491_p8, %p485_p5 }
  0x33   :  { %495 = shalt.err (!%p492_p9)
}
  0x34   :  { %25 = dma.hbm_to_vmem [thread:$0]  %s694_s0, 256, %s20_s10, [#allocation4], %s575_s18, %s575_s18, %s576_s19  }
  0x35   :  { %s577_s6 = smov [#allocation8]   ;;  %s578_s8 = smov [#allocation11]  }
  0x36   :  { %s44_s7 = sshll.u32 %s577_s6, 4  ;;  %s66_s9 = sshll.u32 %s578_s8, 4  ;;  %s45_s7 = int_to_ptr.vmem [resolvable:$true] %s44_s7  ;;  %s67_s9 = int_to_ptr.vmem [resolvable:$true] %s66_s9 }
  0x37   :  { %s496_s13 = scalar_lea.hbm %s696_s2, 32 }
  0x38   :  { %p497_p10 = scmp.ne.s32.totalorder %s696_s2, %s496_s13  ;;  %p500_p11 = scmp.lt.u32.totalorder %s496_s13, %s696_s2 }
  0x3a   :  { %p502_p12 = pnand %p500_p11, %p497_p10 }
  0x3c   :  { %505 = shalt.err (!%p502_p12)
}
  0x3d   :  { %s506_s0 = scalar_lea.vmem %s45_s7, 32  ;;  %p511_p0 = scmp.lt.s32.totalorder %s45_s7, %s45_s7 }
  0x3e   :  { %p507_p13 = scmp.ne.s32.totalorder %s45_s7, %s506_s0  ;;  %p512_p1 = scmp.lt.s32.totalorder %s506_s0, %s506_s0 }
  0x40   :  { %p513_p2 = por %p512_p1, %p511_p0 }
  0x42   :  { %p514_p3 = pnand %p513_p2, %p507_p13 }
  0x44   :  { %517 = shalt.err (!%p514_p3)
}
  0x45   :  { %47 = dma.hbm_to_vmem [thread:$0]  %s696_s2, 32, %s45_s7, [#allocation7]  }
  0x46   :  { %s518_s22 = scalar_lea.hbm %s698_s4, 16 }
  0x47   :  { %p519_p4 = scmp.ne.s32.totalorder %s698_s4, %s518_s22  ;;  %p522_p5 = scmp.lt.u32.totalorder %s518_s22, %s698_s4 }
  0x49   :  { %p524_p6 = pnand %p522_p5, %p519_p4 }
  0x4b   :  { %527 = shalt.err (!%p524_p6)
}
  0x4c   :  { %s528_s27 = scalar_lea.vmem %s67_s9, 16  ;;  %s532_s28 = scalar_lea.vmem %s67_s9, 32 }
  0x4d   :  { %p529_p7 = scmp.ne.s32.totalorder %s67_s9, %s528_s27  ;;  %p533_p8 = scmp.lt.s32.totalorder %s67_s9, %s67_s9 }
  0x4e   :  { %p534_p9 = scmp.lt.s32.totalorder %s532_s28, %s528_s27 }
  0x50   :  { %p535_p10 = por %p534_p9, %p533_p8 }
  0x52   :  { %p536_p11 = pnand %p535_p10, %p529_p7 }
  0x54   :  { %539 = shalt.err (!%p536_p11)
}
  0x55   :  { %69 = dma.hbm_to_vmem [thread:$0]  %s698_s4, 16, %s67_s9, [#allocation10]  }
  0x56   :  { %562 = dma.done.wait [#allocation4], 256  }
  0x57   :  { %563 = vsyncadd [#allocation4], 4294967040 }
  0x58   :  { %564 = dma.done.wait [#allocation7], 1056  }
  0x59   :  { %565 = vsyncadd [#allocation7], 4294966240 }
  0x5a   :  { %566 = dma.done.wait [#allocation10], 4112  }
  0x5b   :  { %567 = vsyncadd [#allocation10], 4294963184  ;;  %v579_v0 = vmov 0.0   ;;  %v92_v1 = vld [vmem:[#allocation6 + $0x8] sm:$0xff]  ;;  %v94_v2 = vld [vmem:[#allocation6 + $0x18] sm:$0xff]  ;;  %vm111_vm0 = vcmask 261120   ;;  %v101_v63 = vlaneseq }
  0x5c   :  { %182 = vmatprep.mubr.f32.mxu0 %v579_v0  ;;  %v91_v3 = vld [vmem:[#allocation6] sm:$0xff]  ;;  %v379_v4 = vpack.c.bf16 %v94_v2, %v92_v1  ;;  %v93_v5 = vld [vmem:[#allocation6 + $0x10] sm:$0xff]  ;;  %v96_v6 = vld [vmem:[#allocation6 + $0x28] sm:$0xff]  ;;  %s580_s4 = smov [#allocation12]  }
  0x5d   :  { %v98_v7 = vld [vmem:[#allocation6 + $0x38] sm:$0xff]  ;;  %v381_v8 = vpack.c.bf16 %v93_v5, %v91_v3  ;;  %v95_v10 = vld [vmem:[#allocation6 + $0x20] sm:$0xff]  ;;  %v97_v11 = vld [vmem:[#allocation6 + $0x30] sm:$0xff]  ;;  %s324_s3 = sshll.u32 %s580_s4, 4  ;;  %s325_s3 = int_to_ptr.vmem [resolvable:$true] %s324_s3 }
  0x5e   :  { %v383_v9 = vpack.c.bf16 %v98_v7, %v96_v6  ;;  %380 = vmatprep.subr.bf16.mxu0 %v379_v4  ;;  %v219_v12 = vld [vmem:[#allocation9 + $0x80] sm:$0xff]  ;;  %v220_v13 = vld [vmem:[#allocation9 + $0x88] sm:$0xff]  ;;  %v385_v14 = vpack.c.bf16 %v97_v11, %v95_v10  ;;  %v221_v18 = vld [vmem:[#allocation9 + $0x90] sm:$0xff]  ;;  %s540_s30 = scalar_lea.vmem %s325_s3, 256  ;;  %p545_p13 = scmp.lt.s32.totalorder %s325_s3, %s325_s3 }
  0x5f   :  { %382 = vmatpush1.bf16.msra.mxu0 %v381_v8  ;;  %v387_v15 = vpack.c.bf16 %v220_v13, %v219_v12  ;;  %v203_v16 = vld [vmem:[#allocation9] sm:$0xff]  ;;  %v204_v17 = vld [vmem:[#allocation9 + $0x8] sm:$0xff]  ;;  %v222_v20 = vld [vmem:[#allocation9 + $0x98] sm:$0xff]  ;;  %p541_p12 = scmp.ne.s32.totalorder %s325_s3, %s540_s30  ;;  %p546_p0 = scmp.lt.s32.totalorder %s540_s30, %s540_s30 }
  0x60   :  { %384 = vmatprep.subr.bf16.mxu0 %v383_v9  ;;  %v389_v19 = vpack.c.bf16 %v204_v17, %v203_v16  ;;  %v205_v21 = vld [vmem:[#allocation9 + $0x10] sm:$0xff]  ;;  %v206_v22 = vld [vmem:[#allocation9 + $0x18] sm:$0xff]  ;;  %v391_v23 = vpack.c.bf16 %v222_v20, %v221_v18  ;;  %v223_v24 = vld [vmem:[#allocation9 + $0xa0] sm:$0xff] }
  0x61   :  { %388 = vmatprep.subr.bf16.mxu1 %v387_v15  ;;  %v224_v25 = vld [vmem:[#allocation9 + $0xa8] sm:$0xff]  ;;  %v393_v26 = vpack.c.bf16 %v206_v22, %v205_v21  ;;  %v207_v29 = vld [vmem:[#allocation9 + $0x20] sm:$0xff]  ;;  %v225_v31 = vld [vmem:[#allocation9 + $0xb0] sm:$0xff]  ;;  %p547_p1 = por %p546_p0, %p545_p13 }
  0x62   :  { %390 = vmatpush3.bf16.msra.mxu1 %v389_v19  ;;  %v89_v27 = vld [vmem:[#allocation3] sm:$0xff]  ;;  %v395_v28 = vpack.c.bf16 %v224_v25, %v223_v24  ;;  %v226_v32 = vld [vmem:[#allocation9 + $0xb8] sm:$0xff]  ;;  %v227_v38 = vld [vmem:[#allocation9 + $0xc0] sm:$0xff] }
  0x63   :  { %386 = vmatpush1.bf16.msra.mxu0 %v385_v14  ;;  %392 = vmatprep.subr.bf16.mxu1 %v391_v23  ;;  %v208_v30 = vld [vmem:[#allocation9 + $0x28] sm:$0xff]  ;;  %v90_v34 = vld [vmem:[#allocation3 + $0x8] sm:$0xff]  ;;  %v399_v35 = vpack.c.bf16 %v226_v32, %v225_v31  ;;  %v211_v42 = vld [vmem:[#allocation9 + $0x40] sm:$0xff]  ;;  %p548_p2 = pnand %p547_p1, %p541_p12 }
  0x64   :  { %v397_v33 = vpack.c.bf16 %v208_v30, %v207_v29  ;;  %v209_v36 = vld [vmem:[#allocation9 + $0x30] sm:$0xff]  ;;  %v210_v37 = vld [vmem:[#allocation9 + $0x38] sm:$0xff]  ;;  %v228_v39 = vld [vmem:[#allocation9 + $0xc8] sm:$0xff] }
  0x65   :  { %v401_v40 = vpack.c.bf16 %v210_v37, %v209_v36  ;;  %v403_v41 = vpack.c.bf16 %v228_v39, %v227_v38  ;;  %v212_v43 = vld [vmem:[#allocation9 + $0x48] sm:$0xff]  ;;  %v229_v44 = vld [vmem:[#allocation9 + $0xd0] sm:$0xff]  ;;  %v230_v45 = vld [vmem:[#allocation9 + $0xd8] sm:$0xff] }
  0x66   :  { %338 = vmatmul.mubr.msk.f32.vlgmr.msra.gmra.mrb[0].mxu0 %vm111_vm0, %v89_v27  ;;  %394 = vmatpush3.bf16.msra.mxu1 %v393_v26  ;;  %v405_v46 = vpack.c.bf16 %v212_v43, %v211_v42  ;;  %v407_v47 = vpack.c.bf16 %v230_v45, %v229_v44  ;;  %v213_v48 = vld [vmem:[#allocation9 + $0x50] sm:$0xff]  ;;  %v214_v49 = vld [vmem:[#allocation9 + $0x58] sm:$0xff]  ;;  %v231_v50 = vld [vmem:[#allocation9 + $0xe0] sm:$0xff] }
  0x67   :  { %188 = vmatprep.mubr.f32.mxu0 %v579_v0  ;;  %396 = vmatprep.subr.bf16.mxu1 %v395_v28  ;;  %v232_v51 = vld [vmem:[#allocation9 + $0xe8] sm:$0xff]  ;;  %v409_v52 = vpack.c.bf16 %v214_v49, %v213_v48  ;;  %v215_v54 = vld [vmem:[#allocation9 + $0x60] sm:$0xff]  ;;  %v233_v57 = vld [vmem:[#allocation9 + $0xf0] sm:$0xff]  ;;  %v102_v0 = vshrl.u32 %v101_v63, 7 }
  0x68   :  { %v411_v53 = vpack.c.bf16 %v232_v51, %v231_v50  ;;  %v216_v55 = vld [vmem:[#allocation9 + $0x68] sm:$0xff]  ;;  %v234_v58 = vld [vmem:[#allocation9 + $0xf8] sm:$0xff]  ;;  %v217_v60 = vld [vmem:[#allocation9 + $0x70] sm:$0xff] }
  0x69   :  { %v413_v56 = vpack.c.bf16 %v216_v55, %v215_v54  ;;  %v415_v59 = vpack.c.bf16 %v234_v58, %v233_v57  ;;  %v218_v61 = vld [vmem:[#allocation9 + $0x78] sm:$0xff]  ;;  %v107_v1 = vsub.s32 1, %v102_v0  ;;  %v103_v3 = vsub.s32 0, %v102_v0  ;;  %v340_v15 = vld [vmem:[#allocation11] ss:$0 sm:$0xff] }
  0x6a   :  { %339 = vmatmul.mubr.msk.f32.gmra.mrb[2].mxu0 %vm111_vm0, %v90_v34  ;;  %398 = vmatpush3.bf16.msra.mxu1 %v397_v33  ;;  %v417_v62 = vpack.c.bf16 %v218_v61, %v217_v60  ;;  %v99_v2 = vld [vmem:[#allocation8] sm:$0x3] }
  0x6b   :  { %400 = vmatprep.subr.bf16.mxu1 %v399_v35  ;;  %v108_v4 = vrot.slane %v99_v2, %v107_v1  ;;  %v104_v5 = vrot.slane %v99_v2, %v103_v3 }
  0x6e   :  { %402 = vmatpush3.bf16.msra.mxu1 %v401_v40 }
  0x6f   :  { %404 = vmatprep.subr.bf16.mxu1 %v403_v41 }
  0x72   :  { %406 = vmatpush3.bf16.msra.mxu1 %v405_v46 }
  0x73   :  { %408 = vmatprep.subr.bf16.mxu1 %v407_v47 }
  0x76   :  { %410 = vmatpush3.bf16.msra.mxu1 %v409_v52 }
  0x77   :  { %412 = vmatprep.subr.bf16.mxu1 %v411_v53 }
  0x7a   :  { %414 = vmatpush3.bf16.msra.mxu1 %v413_v56 }
  0x7b   :  { %416 = vmatprep.subr.bf16.mxu1 %v415_v59 }
  0x7e   :  { %418 = vmatpush3.bf16.msra.mxu1 %v417_v62 }
 0x139   :  { %v184_v6 = vpop.f32.mrb[0].mxu0 }
 0x13a   :  { %v186_v7 = vpop.f32.mrb[1].mxu0  ;;  %v185_v9 = vadd.f32 %v184_v6, %v104_v5 }
 0x13b   :  { %v187_v8 = vadd.f32 %v186_v7, %v108_v4 }
 0x13d   :  { %v190_v10 = vpop.f32.mrb[2].mxu0  ;;  %306 = vmatprep.mubr.f32.mxu1 %v187_v8 }
 0x13e   :  { %v192_v11 = vpop.f32.mrb[3].mxu0  ;;  %307 = vmatmul.mubr.f32.vlgmr.msra.gmra.mrb[0].mxu1 %v185_v9  ;;  %v191_v13 = vadd.f32 %v190_v10, %v104_v5 }
 0x13f   :  { %v193_v12 = vadd.f32 %v192_v11, %v108_v4 }
 0x141   :  { %311 = vmatprep.mubr.f32.mxu1 %v193_v12 }
 0x142   :  { %312 = vmatmul.mubr.f32.gmra.mrb[2].mxu1 %v191_v13 }
 0x211   :  { %v373_v14 = vpop.f32.mrb[0].mxu1 }
 0x212   :  { %v374_v16 = vpop.f32.mrb[1].mxu1 }
 0x213   :  { %v375_v17 = vadd.f32 %v374_v16, %v373_v14 }
 0x215   :  { %v309_v18 = vadd.f32 %v375_v17, %v340_v15  ;;  %v376_v19 = vpop.f32.mrb[2].mxu1 }
 0x216   :  { %v377_v20 = vpop.f32.mrb[3].mxu1 }
 0x217   :  { %317 = vst [vmem:[#allocation12] sm:$0xff] %v309_v18  ;;  %v378_v21 = vadd.f32 %v377_v20, %v376_v19 }
 0x219   :  { %v314_v22 = vadd.f32 %v378_v21, %v340_v15 }
 0x21b   :  { %318 = vst [vmem:[#allocation12 + $0x8] sm:$0xff] %v314_v22 }
 0x21c   :  { %551 = shalt.err (!%p548_p2)
}
 0x21d   :  { %s552_s8 = scalar_lea.hbm %s699_s5, 256 }
 0x21e   :  { %p553_p3 = scmp.ne.s32.totalorder %s699_s5, %s552_s8  ;;  %p556_p4 = scmp.lt.u32.totalorder %s552_s8, %s699_s5 }
 0x220   :  { %p558_p5 = pnand %p556_p4, %p553_p3 }
 0x222   :  { %561 = shalt.err (!%p558_p5)
}
 0x223   :  { %330 = dma.vmem_to_hbm [thread:$0]  %s325_s3, 256, %s699_s5, [#allocation5], %s575_s18, %s575_s18, %s576_s19  }
 0x224   :  { %568 = dma.done.wait [#allocation5], 256  }
 0x225   :  { %569 = vsyncadd [#allocation5], 4294967040 }
 0x226   :  { %334 = vsyncpa [#allocation4], 1 }
 0x227   :  { %335 = vsyncpa [#allocation7], 1 }
 0x228   :  { %336 = vsyncpa [#allocation10], 1 }
 0x229   :  { %337 = vsyncpa [#allocation5], 1 }

// kernel: tpu_custom_call.1
= control target key start
LH: loop header
LB: loop body
LE: loop exit
PB: predicated region body
PF: predicated region fallthrough
CT: control target
= control target key end

     0   :  { %10 = vsyncpa [#allocation4], 0  ;;  %s694_s0 = inlined_call_operand.hbm [shape: f32[16,32], index: 0, kind: input, shape index: {}]   ;;  %s695_s1 = inlined_call_operand.hbm [shape: f32[32,256], index: 1, kind: input, shape index: {}]   ;;  %s696_s2 = inlined_call_operand.hbm [shape: f32[1,256], index: 2, kind: input, shape index: {}]   ;;  %s697_s3 = inlined_call_operand.hbm [shape: f32[256,128], index: 3, kind: input, shape index: {}]   ;;  %s698_s4 = inlined_call_operand.hbm [shape: f32[1,128], index: 4, kind: input, shape index: {}]   ;;  %s699_s5 = inlined_call_operand.hbm [shape: f32[16,128], index: 5, kind: output, shape index: {}]  }
   0x1   :  { %11 = vsyncpa [#allocation7], 0 }
   0x2   :  { %12 = vsyncpa [#allocation10], 0 }
   0x3   :  { %13 = vsyncpa [#allocation5], 0  ;;  %s570_s18 = smov [#allocation6]   ;;  %s430_s22 = scalar_lea.hbm %s695_s1, 1024 }
   0x4   :  { %s31_s19 = sshll.u32 %s570_s18, 4  ;;  %p431_p0 = scmp.ne.s32.totalorder %s695_s1, %s430_s22  ;;  %s32_s19 = int_to_ptr.vmem [resolvable:$true] %s31_s19 }
   0x5   :  { %p434_p1 = scmp.lt.u32.totalorder %s430_s22, %s695_s1 }
   0x7   :  { %p436_p2 = pnand %p434_p1, %p431_p0 }
   0x9   :  { %439 = shalt.err (!%p436_p2)
}
   0xa   :  { %s440_s27 = scalar_lea.vmem %s32_s19, 1024  ;;  %p445_p4 = scmp.lt.s32.totalorder %s32_s19, %s32_s19 }
   0xb   :  { %p441_p3 = scmp.ne.s32.totalorder %s32_s19, %s440_s27  ;;  %p446_p5 = scmp.lt.s32.totalorder %s440_s27, %s440_s27 }
   0xd   :  { %p447_p6 = por %p446_p5, %p445_p4 }
   0xf   :  { %p448_p7 = pnand %p447_p6, %p441_p3 }
  0x11   :  { %451 = shalt.err (!%p448_p7)
}
  0x12   :  { %s571_s28 = smov 256   ;;  %s572_s29 = smov 16  }
  0x13   :  { %37 = dma.hbm_to_vmem [thread:$0]  %s695_s1, 1024, %s32_s19, [#allocation7], %s571_s28, %s571_s28, %s572_s29  }
  0x14   :  { %s573_s7 = smov [#allocation9]   ;;  %s574_s9 = smov [#allocation3]  }
  0x15   :  { %s53_s8 = sshll.u32 %s573_s7, 4  ;;  %s19_s10 = sshll.u32 %s574_s9, 4  ;;  %s54_s8 = int_to_ptr.vmem [resolvable:$true] %s53_s8  ;;  %s20_s10 = int_to_ptr.vmem [resolvable:$true] %s19_s10 }
  0x16   :  { %s452_s13 = scalar_lea.hbm %s697_s3, 4096 }
  0x17   :  { %p453_p8 = scmp.ne.s32.totalorder %s697_s3, %s452_s13  ;;  %p456_p9 = scmp.lt.u32.totalorder %s452_s13, %s697_s3 }
  0x19   :  { %p458_p10 = pnand %p456_p9, %p453_p8 }
  0x1b   :  { %461 = shalt.err (!%p458_p10)
}
  0x1c   :  { %s462_s1 = scalar_lea.vmem %s54_s8, 4096  ;;  %p467_p12 = scmp.lt.s32.totalorder %s54_s8, %s54_s8 }
  0x1d   :  { %p463_p11 = scmp.ne.s32.totalorder %s54_s8, %s462_s1  ;;  %p468_p13 = scmp.lt.s32.totalorder %s462_s1, %s462_s1 }
  0x1f   :  { %p469_p0 = por %p468_p13, %p467_p12 }
  0x21   :  { %p470_p1 = pnand %p469_p0, %p463_p11 }
  0x23   :  { %473 = shalt.err (!%p470_p1)
}
  0x24   :  { %s575_s18 = smov 128   ;;  %s576_s19 = smov 8  }
  0x25   :  { %59 = dma.hbm_to_vmem [thread:$0]  %s697_s3, 4096, %s54_s8, [#allocation10], %s575_s18, %s575_s18, %s576_s19  }
  0x26   :  { %s474_s24 = scalar_lea.hbm %s694_s0, 256 }
  0x27   :  { %p475_p2 = scmp.ne.s32.totalorder %s694_s0, %s474_s24  ;;  %p478_p3 = scmp.lt.u32.totalorder %s474_s24, %s694_s0 }
  0x29   :  { %p480_p4 = pnand %p478_p3, %p475_p2 }
  0x2b   :  { %483 = shalt.err (!%p480_p4)
}
  0x2c   :  { %s484_s29 = scalar_lea.vmem %s20_s10, 256  ;;  %p489_p6 = scmp.lt.s32.totalorder %s20_s10, %s20_s10 }
  0x2d   :  { %p485_p5 = scmp.ne.s32.totalorder %s20_s10, %s484_s29  ;;  %p490_p7 = scmp.lt.s32.totalorder %s484_s29, %s484_s29 }
  0x2f   :  { %p491_p8 = por %p490_p7, %p489_p6 }
  0x31   :  { %p492_p9 = pnand %p491_p8, %p485_p5 }
  0x33   :  { %495 = shalt.err (!%p492_p9)
}
  0x34   :  { %25 = dma.hbm_to_vmem [thread:$0]  %s694_s0, 256, %s20_s10, [#allocation4], %s575_s18, %s575_s18, %s576_s19  }
  0x35   :  { %s577_s6 = smov [#allocation8]   ;;  %s578_s8 = smov [#allocation11]  }
  0x36   :  { %s44_s7 = sshll.u32 %s577_s6, 4  ;;  %s66_s9 = sshll.u32 %s578_s8, 4  ;;  %s45_s7 = int_to_ptr.vmem [resolvable:$true] %s44_s7  ;;  %s67_s9 = int_to_ptr.vmem [resolvable:$true] %s66_s9 }
  0x37   :  { %s496_s13 = scalar_lea.hbm %s696_s2, 32 }
  0x38   :  { %p497_p10 = scmp.ne.s32.totalorder %s696_s2, %s496_s13  ;;  %p500_p11 = scmp.lt.u32.totalorder %s496_s13, %s696_s2 }
  0x3a   :  { %p502_p12 = pnand %p500_p11, %p497_p10 }
  0x3c   :  { %505 = shalt.err (!%p502_p12)
}
  0x3d   :  { %s506_s0 = scalar_lea.vmem %s45_s7, 32  ;;  %p511_p0 = scmp.lt.s32.totalorder %s45_s7, %s45_s7 }
  0x3e   :  { %p507_p13 = scmp.ne.s32.totalorder %s45_s7, %s506_s0  ;;  %p512_p1 = scmp.lt.s32.totalorder %s506_s0, %s506_s0 }
  0x40   :  { %p513_p2 = por %p512_p1, %p511_p0 }
  0x42   :  { %p514_p3 = pnand %p513_p2, %p507_p13 }
  0x44   :  { %517 = shalt.err (!%p514_p3)
}
  0x45   :  { %47 = dma.hbm_to_vmem [thread:$0]  %s696_s2, 32, %s45_s7, [#allocation7]  }
  0x46   :  { %s518_s22 = scalar_lea.hbm %s698_s4, 16 }
  0x47   :  { %p519_p4 = scmp.ne.s32.totalorder %s698_s4, %s518_s22  ;;  %p522_p5 = scmp.lt.u32.totalorder %s518_s22, %s698_s4 }
  0x49   :  { %p524_p6 = pnand %p522_p5, %p519_p4 }
  0x4b   :  { %527 = shalt.err (!%p524_p6)
}
  0x4c   :  { %s528_s27 = scalar_lea.vmem %s67_s9, 16  ;;  %s532_s28 = scalar_lea.vmem %s67_s9, 32 }
  0x4d   :  { %p529_p7 = scmp.ne.s32.totalorder %s67_s9, %s528_s27  ;;  %p533_p8 = scmp.lt.s32.totalorder %s67_s9, %s67_s9 }
  0x4e   :  { %p534_p9 = scmp.lt.s32.totalorder %s532_s28, %s528_s27 }
  0x50   :  { %p535_p10 = por %p534_p9, %p533_p8 }
  0x52   :  { %p536_p11 = pnand %p535_p10, %p529_p7 }
  0x54   :  { %539 = shalt.err (!%p536_p11)
}
  0x55   :  { %69 = dma.hbm_to_vmem [thread:$0]  %s698_s4, 16, %s67_s9, [#allocation10]  }
  0x56   :  { %562 = dma.done.wait [#allocation4], 256  }
  0x57   :  { %563 = vsyncadd [#allocation4], 4294967040 }
  0x58   :  { %564 = dma.done.wait [#allocation7], 1056  }
  0x59   :  { %565 = vsyncadd [#allocation7], 4294966240 }
  0x5a   :  { %566 = dma.done.wait [#allocation10], 4112  }
  0x5b   :  { %567 = vsyncadd [#allocation10], 4294963184  ;;  %v579_v0 = vmov 0.0   ;;  %v92_v1 = vld [vmem:[#allocation6 + $0x8] sm:$0xff]  ;;  %v94_v2 = vld [vmem:[#allocation6 + $0x18] sm:$0xff]  ;;  %vm111_vm0 = vcmask 261120   ;;  %v101_v63 = vlaneseq }
  0x5c   :  { %182 = vmatprep.mubr.f32.mxu0 %v579_v0  ;;  %v91_v3 = vld [vmem:[#allocation6] sm:$0xff]  ;;  %v379_v4 = vpack.c.bf16 %v94_v2, %v92_v1  ;;  %v93_v5 = vld [vmem:[#allocation6 + $0x10] sm:$0xff]  ;;  %v96_v6 = vld [vmem:[#allocation6 + $0x28] sm:$0xff]  ;;  %s580_s4 = smov [#allocation12]  }
  0x5d   :  { %v98_v7 = vld [vmem:[#allocation6 + $0x38] sm:$0xff]  ;;  %v381_v8 = vpack.c.bf16 %v93_v5, %v91_v3  ;;  %v95_v10 = vld [vmem:[#allocation6 + $0x20] sm:$0xff]  ;;  %v97_v11 = vld [vmem:[#allocation6 + $0x30] sm:$0xff]  ;;  %s324_s3 = sshll.u32 %s580_s4, 4  ;;  %s325_s3 = int_to_ptr.vmem [resolvable:$true] %s324_s3 }
  0x5e   :  { %v383_v9 = vpack.c.bf16 %v98_v7, %v96_v6  ;;  %380 = vmatprep.subr.bf16.mxu0 %v379_v4  ;;  %v219_v12 = vld [vmem:[#allocation9 + $0x80] sm:$0xff]  ;;  %v220_v13 = vld [vmem:[#allocation9 + $0x88] sm:$0xff]  ;;  %v385_v14 = vpack.c.bf16 %v97_v11, %v95_v10  ;;  %v221_v18 = vld [vmem:[#allocation9 + $0x90] sm:$0xff]  ;;  %s540_s30 = scalar_lea.vmem %s325_s3, 256  ;;  %p545_p13 = scmp.lt.s32.totalorder %s325_s3, %s325_s3 }
  0x5f   :  { %382 = vmatpush1.bf16.msra.mxu0 %v381_v8  ;;  %v387_v15 = vpack.c.bf16 %v220_v13, %v219_v12  ;;  %v203_v16 = vld [vmem:[#allocation9] sm:$0xff]  ;;  %v204_v17 = vld [vmem:[#allocation9 + $0x8] sm:$0xff]  ;;  %v222_v20 = vld [vmem:[#allocation9 + $0x98] sm:$0xff]  ;;  %p541_p12 = scmp.ne.s32.totalorder %s325_s3, %s540_s30  ;;  %p546_p0 = scmp.lt.s32.totalorder %s540_s30, %s540_s30 }
  0x60   :  { %384 = vmatprep.subr.bf16.mxu0 %v383_v9  ;;  %v389_v19 = vpack.c.bf16 %v204_v17, %v203_v16  ;;  %v205_v21 = vld [vmem:[#allocation9 + $0x10] sm:$0xff]  ;;  %v206_v22 = vld [vmem:[#allocation9 + $0x18] sm:$0xff]  ;;  %v391_v23 = vpack.c.bf16 %v222_v20, %v221_v18  ;;  %v223_v24 = vld [vmem:[#allocation9 + $0xa0] sm:$0xff] }
  0x61   :  { %388 = vmatprep.subr.bf16.mxu1 %v387_v15  ;;  %v224_v25 = vld [vmem:[#allocation9 + $0xa8] sm:$0xff]  ;;  %v393_v26 = vpack.c.bf16 %v206_v22, %v205_v21  ;;  %v207_v29 = vld [vmem:[#allocation9 + $0x20] sm:$0xff]  ;;  %v225_v31 = vld [vmem:[#allocation9 + $0xb0] sm:$0xff]  ;;  %p547_p1 = por %p546_p0, %p545_p13 }
  0x62   :  { %390 = vmatpush3.bf16.msra.mxu1 %v389_v19  ;;  %v89_v27 = vld [vmem:[#allocation3] sm:$0xff]  ;;  %v395_v28 = vpack.c.bf16 %v224_v25, %v223_v24  ;;  %v226_v32 = vld [vmem:[#allocation9 + $0xb8] sm:$0xff]  ;;  %v227_v38 = vld [vmem:[#allocation9 + $0xc0] sm:$0xff] }
  0x63   :  { %386 = vmatpush1.bf16.msra.mxu0 %v385_v14  ;;  %392 = vmatprep.subr.bf16.mxu1 %v391_v23  ;;  %v208_v30 = vld [vmem:[#allocation9 + $0x28] sm:$0xff]  ;;  %v90_v34 = vld [vmem:[#allocation3 + $0x8] sm:$0xff]  ;;  %v399_v35 = vpack.c.bf16 %v226_v32, %v225_v31  ;;  %v211_v42 = vld [vmem:[#allocation9 + $0x40] sm:$0xff]  ;;  %p548_p2 = pnand %p547_p1, %p541_p12 }
  0x64   :  { %v397_v33 = vpack.c.bf16 %v208_v30, %v207_v29  ;;  %v209_v36 = vld [vmem:[#allocation9 + $0x30] sm:$0xff]  ;;  %v210_v37 = vld [vmem:[#allocation9 + $0x38] sm:$0xff]  ;;  %v228_v39 = vld [vmem:[#allocation9 + $0xc8] sm:$0xff] }
  0x65   :  { %v401_v40 = vpack.c.bf16 %v210_v37, %v209_v36  ;;  %v403_v41 = vpack.c.bf16 %v228_v39, %v227_v38  ;;  %v212_v43 = vld [vmem:[#allocation9 + $0x48] sm:$0xff]  ;;  %v229_v44 = vld [vmem:[#allocation9 + $0xd0] sm:$0xff]  ;;  %v230_v45 = vld [vmem:[#allocation9 + $0xd8] sm:$0xff] }
  0x66   :  { %338 = vmatmul.mubr.msk.f32.vlgmr.msra.gmra.mrb[0].mxu0 %vm111_vm0, %v89_v27  ;;  %394 = vmatpush3.bf16.msra.mxu1 %v393_v26  ;;  %v405_v46 = vpack.c.bf16 %v212_v43, %v211_v42  ;;  %v407_v47 = vpack.c.bf16 %v230_v45, %v229_v44  ;;  %v213_v48 = vld [vmem:[#allocation9 + $0x50] sm:$0xff]  ;;  %v214_v49 = vld [vmem:[#allocation9 + $0x58] sm:$0xff]  ;;  %v231_v50 = vld [vmem:[#allocation9 + $0xe0] sm:$0xff] }
  0x67   :  { %188 = vmatprep.mubr.f32.mxu0 %v579_v0  ;;  %396 = vmatprep.subr.bf16.mxu1 %v395_v28  ;;  %v232_v51 = vld [vmem:[#allocation9 + $0xe8] sm:$0xff]  ;;  %v409_v52 = vpack.c.bf16 %v214_v49, %v213_v48  ;;  %v215_v54 = vld [vmem:[#allocation9 + $0x60] sm:$0xff]  ;;  %v233_v57 = vld [vmem:[#allocation9 + $0xf0] sm:$0xff]  ;;  %v102_v0 = vshrl.u32 %v101_v63, 7 }
  0x68   :  { %v411_v53 = vpack.c.bf16 %v232_v51, %v231_v50  ;;  %v216_v55 = vld [vmem:[#allocation9 + $0x68] sm:$0xff]  ;;  %v234_v58 = vld [vmem:[#allocation9 + $0xf8] sm:$0xff]  ;;  %v217_v60 = vld [vmem:[#allocation9 + $0x70] sm:$0xff] }
  0x69   :  { %v413_v56 = vpack.c.bf16 %v216_v55, %v215_v54  ;;  %v415_v59 = vpack.c.bf16 %v234_v58, %v233_v57  ;;  %v218_v61 = vld [vmem:[#allocation9 + $0x78] sm:$0xff]  ;;  %v107_v1 = vsub.s32 1, %v102_v0  ;;  %v103_v3 = vsub.s32 0, %v102_v0  ;;  %v340_v15 = vld [vmem:[#allocation11] ss:$0 sm:$0xff] }
  0x6a   :  { %339 = vmatmul.mubr.msk.f32.gmra.mrb[2].mxu0 %vm111_vm0, %v90_v34  ;;  %398 = vmatpush3.bf16.msra.mxu1 %v397_v33  ;;  %v417_v62 = vpack.c.bf16 %v218_v61, %v217_v60  ;;  %v99_v2 = vld [vmem:[#allocation8] sm:$0x3] }
  0x6b   :  { %400 = vmatprep.subr.bf16.mxu1 %v399_v35  ;;  %v108_v4 = vrot.slane %v99_v2, %v107_v1  ;;  %v104_v5 = vrot.slane %v99_v2, %v103_v3 }
  0x6e   :  { %402 = vmatpush3.bf16.msra.mxu1 %v401_v40 }
  0x6f   :  { %404 = vmatprep.subr.bf16.mxu1 %v403_v41 }
  0x72   :  { %406 = vmatpush3.bf16.msra.mxu1 %v405_v46 }
  0x73   :  { %408 = vmatprep.subr.bf16.mxu1 %v407_v47 }
  0x76   :  { %410 = vmatpush3.bf16.msra.mxu1 %v409_v52 }
  0x77   :  { %412 = vmatprep.subr.bf16.mxu1 %v411_v53 }
  0x7a   :  { %414 = vmatpush3.bf16.msra.mxu1 %v413_v56 }
  0x7b   :  { %416 = vmatprep.subr.bf16.mxu1 %v415_v59 }
  0x7e   :  { %418 = vmatpush3.bf16.msra.mxu1 %v417_v62 }
 0x139   :  { %v184_v6 = vpop.f32.mrb[0].mxu0 }
 0x13a   :  { %v186_v7 = vpop.f32.mrb[1].mxu0  ;;  %v185_v9 = vadd.f32 %v184_v6, %v104_v5 }
 0x13b   :  { %v187_v8 = vadd.f32 %v186_v7, %v108_v4 }
 0x13d   :  { %v190_v10 = vpop.f32.mrb[2].mxu0  ;;  %306 = vmatprep.mubr.f32.mxu1 %v187_v8 }
 0x13e   :  { %v192_v11 = vpop.f32.mrb[3].mxu0  ;;  %307 = vmatmul.mubr.f32.vlgmr.msra.gmra.mrb[0].mxu1 %v185_v9  ;;  %v191_v13 = vadd.f32 %v190_v10, %v104_v5 }
 0x13f   :  { %v193_v12 = vadd.f32 %v192_v11, %v108_v4 }
 0x141   :  { %311 = vmatprep.mubr.f32.mxu1 %v193_v12 }
 0x142   :  { %312 = vmatmul.mubr.f32.gmra.mrb[2].mxu1 %v191_v13 }
 0x211   :  { %v373_v14 = vpop.f32.mrb[0].mxu1 }
 0x212   :  { %v374_v16 = vpop.f32.mrb[1].mxu1 }
 0x213   :  { %v375_v17 = vadd.f32 %v374_v16, %v373_v14 }
 0x215   :  { %v309_v18 = vadd.f32 %v375_v17, %v340_v15  ;;  %v376_v19 = vpop.f32.mrb[2].mxu1 }
 0x216   :  { %v377_v20 = vpop.f32.mrb[3].mxu1 }
 0x217   :  { %317 = vst [vmem:[#allocation12] sm:$0xff] %v309_v18  ;;  %v378_v21 = vadd.f32 %v377_v20, %v376_v19 }
 0x219   :  { %v314_v22 = vadd.f32 %v378_v21, %v340_v15 }
 0x21b   :  { %318 = vst [vmem:[#allocation12 + $0x8] sm:$0xff] %v314_v22 }
 0x21c   :  { %551 = shalt.err (!%p548_p2)
}
 0x21d   :  { %s552_s8 = scalar_lea.hbm %s699_s5, 256 }
 0x21e   :  { %p553_p3 = scmp.ne.s32.totalorder %s699_s5, %s552_s8  ;;  %p556_p4 = scmp.lt.u32.totalorder %s552_s8, %s699_s5 }
 0x220   :  { %p558_p5 = pnand %p556_p4, %p553_p3 }
 0x222   :  { %561 = shalt.err (!%p558_p5)
}
 0x223   :  { %330 = dma.vmem_to_hbm [thread:$0]  %s325_s3, 256, %s699_s5, [#allocation5], %s575_s18, %s575_s18, %s576_s19  }
 0x224   :  { %568 = dma.done.wait [#allocation5], 256  }
 0x225   :  { %569 = vsyncadd [#allocation5], 4294967040 }
 0x226   :  { %334 = vsyncpa [#allocation4], 1 }
 0x227   :  { %335 = vsyncpa [#allocation7], 1 }
 0x228   :  { %336 = vsyncpa [#allocation10], 1 }
 0x229   :  { %337 = vsyncpa [#allocation5], 1 }

</bundles_post_ra>
